<compile_context>
chip_gen: v6e
topology: v6e:2x2x1
jax: 0.10.0
libtpu: 0.0.40
codegen_flags: <defaults>
</compile_context>

<pallas_src>
import functools

import jax
import jax.numpy as jnp
from jax.experimental import pallas as pl
from jax.experimental.pallas import tpu as pltpu

_LANE = 128     # vreg lane width (last dim)
_SUBLANE = 8    # f32 sublane count (second-to-last dim)


def _round_up(n, m):
    return (n + m - 1) // m * m


def _mlp_kernel(*refs, num_hidden, unroll):
    """x:(tb,Dp)  w1:(Dp,Hp)  b1:(1,Hp)  [wh:(NH,Hp,Hp) bh:(NH,1,Hp)]
       w2:(Hp,128)  b2:(1,) SMEM  o:(tb,1)"""
    if num_hidden > 0:
        x_ref, w1_ref, b1_ref, wh_ref, bh_ref, w2_ref, b2_ref, o_ref = refs
    else:
        x_ref, w1_ref, b1_ref, w2_ref, b2_ref, o_ref = refs
        wh_ref = bh_ref = None

    wdt = w1_ref.dtype

    # fc1 + ReLU: MXU in operand dtype (bf16 or f32), f32 accumulation / elementwise.
    h = jnp.dot(x_ref[...].astype(wdt), w1_ref[...],
                preferred_element_type=jnp.float32)
    h = jnp.maximum(h + b1_ref[...], 0.0)

    if num_hidden > 0:
        if unroll:
            # Shallow static depth: fully unroll into the kernel body.
            for i in range(num_hidden):
                h = jnp.dot(h.astype(wdt), wh_ref[i],
                            preferred_element_type=jnp.float32) + bh_ref[i]
                h = jnp.maximum(h, 0.0)
        else:
            # Deep models: bounded live ranges; unroll=2 keeps some ILP visible
            # to the scheduler (bias/ReLU of layer i overlaps layer i+1's matmul).
            def body(i, hc):
                hi = jnp.dot(hc.astype(wdt), wh_ref[i],
                             preferred_element_type=jnp.float32) + bh_ref[i]
                return jnp.maximum(hi, 0.0)
            h = jax.lax.fori_loop(0, num_hidden, body, h, unroll=2)

    # fc2 against a lane-dense (Hp, 128) padded weight; only column 0 is real.
    out = jnp.dot(h.astype(wdt), w2_ref[...],
                  preferred_element_type=jnp.float32)
    out = out + b2_ref[0]                         # scalar bias from SMEM
    # Store only the real column -> (tb, 1) block, no 128x write amplification.
    o_ref[...] = out[:, :1].astype(o_ref.dtype)


def init_params(key, input_dim, hidden_dim, num_layers, dtype=jnp.float32):
    """Deterministic synthetic parameters matching BaseModel.__init__ shapes
    (weights stored pre-transposed as (in, out))."""
    num_hidden = num_layers - 1
    keys = jax.random.split(key, 2 * (num_hidden + 2))
    ki = iter(keys)

    def lin(kw, kb, fan_in, fan_out):
        bound = 1.0 / jnp.sqrt(jnp.asarray(fan_in, jnp.float32))
        w = jax.random.uniform(kw, (fan_in, fan_out), dtype, -bound, bound)
        b = jax.random.uniform(kb, (1, fan_out), dtype, -bound, bound)
        return w, b

    w1, b1 = lin(next(ki), next(ki), input_dim, hidden_dim)
    wh_list, bh_list = [], []
    for _ in range(num_hidden):
        w, b = lin(next(ki), next(ki), hidden_dim, hidden_dim)
        wh_list.append(w)
        bh_list.append(b)
    w2, b2 = lin(next(ki), next(ki), hidden_dim, 1)

    if num_hidden > 0:
        wh = jnp.stack(wh_list)     # (NH, H, H)
        bh = jnp.stack(bh_list)     # (NH, 1, H)
    else:
        wh = None                   # never allocated / DMA'd when unused
        bh = None
    return dict(w1=w1, b1=b1, wh=wh, bh=bh, w2=w2, b2=b2)


def pack_params(params, *, compute_dtype=jnp.bfloat16):
    """One-time lane-dense padding + cast of the weights.

    Do this ONCE (outside the forward loop): re-padding on every call costs a full
    extra HBM round trip over all weights.  bf16 operands give native MXU rate and
    half the weight DMA bytes; biases stay f32 (added to the f32 accumulator)."""
    w1, b1, wh, bh, w2, b2 = (params["w1"], params["b1"], params["wh"],
                              params["bh"], params["w2"], params["b2"])
    D_in, H = w1.shape
    num_hidden = 0 if wh is None else int(wh.shape[0])
    Dp = _round_up(D_in, _LANE)
    Hp = _round_up(H, _LANE)
    wdt = compute_dtype

    w1p = jnp.zeros((Dp, Hp), wdt).at[:D_in, :H].set(w1.astype(wdt))
    b1p = jnp.zeros((1, Hp), jnp.float32).at[:, :H].set(b1.astype(jnp.float32))
    w2p = jnp.zeros((Hp, _LANE), wdt).at[:H, :1].set(w2.astype(wdt))
    b2s = b2.reshape((1,)).astype(jnp.float32)           # scalar bias -> SMEM
    if num_hidden > 0:
        whp = jnp.zeros((num_hidden, Hp, Hp), wdt).at[:, :H, :H].set(wh.astype(wdt))
        bhp = jnp.zeros((num_hidden, 1, Hp), jnp.float32).at[:, :, :H].set(
            bh.astype(jnp.float32))
    else:
        whp = bhp = None

    return dict(w1p=w1p, b1p=b1p, whp=whp, bhp=bhp, w2p=w2p, b2s=b2s,
                input_dim=D_in, hidden_dim=H, num_hidden=num_hidden,
                compute_dtype=wdt)


def base_model_forward(x, packed, *, batch_tile=None, vmem_limit_bytes=None):
    B, D_in = x.shape
    assert D_in == packed["input_dim"]
    num_hidden = packed["num_hidden"]
    wdt = packed["compute_dtype"]
    Dp, Hp = packed["w1p"].shape

    # Batch tile: multiple of 8; sized so the batch grid has >= 2 steps when B
    # allows it (v7x megacore), capped at 512 rows per step.
    if batch_tile is None:
        tb = min(512, max(_SUBLANE, _round_up(-(-B // 2), _SUBLANE)))
    else:
        tb = batch_tile
    assert tb % _SUBLANE == 0, "batch_tile must be a multiple of 8"
    Bp = _round_up(B, tb)
    grid = (Bp // tb,)

    # x: skip the wrapper-side pad/cast pass entirely when already aligned; the
    # kernel casts the loaded tile to the compute dtype.
    if Bp == B and Dp == D_in:
        xp = x
    else:
        xp = jnp.zeros((Bp, Dp), wdt).at[:B, :D_in].set(x.astype(wdt))

    single = pl.Buffered(1)   # grid-invariant blocks: 2nd pipeline buffer is waste

    in_specs = [
        pl.BlockSpec((tb, Dp), lambda i: (i, 0)),                                  # x
        pl.BlockSpec((Dp, Hp), lambda i: (0, 0), pipeline_mode=single),            # w1
        pl.BlockSpec((1, Hp), lambda i: (0, 0), pipeline_mode=single),             # b1
    ]
    args = [xp, packed["w1p"], packed["b1p"]]

    if num_hidden > 0:
        # TODO(synk): for very large num_hidden*Hp^2 (v7x 64 MiB VMEM), stream one
        # (Hp, Hp) layer at a time from HBM (memory_space=pl.ANY + make_async_copy
        # double-buffer) instead of keeping the whole stack resident.
        in_specs += [
            pl.BlockSpec((num_hidden, Hp, Hp), lambda i: (0, 0, 0),
                         pipeline_mode=single),                                    # wh
            pl.BlockSpec((num_hidden, 1, Hp), lambda i: (0, 0, 0),
                         pipeline_mode=single),                                    # bh
        ]
        args += [packed["whp"], packed["bhp"]]

    in_specs += [
        pl.BlockSpec((Hp, _LANE), lambda i: (0, 0), pipeline_mode=single),         # w2
        pl.BlockSpec(memory_space=pltpu.MemorySpace.SMEM),                         # b2
    ]
    args += [packed["w2p"], packed["b2s"]]

    # Explicit VMEM budget: weights (conservatively x2) + double-buffered x/out
    # tiles + headroom, capped at 64 MiB so it is valid on v7x as well.
    if vmem_limit_bytes is None:
        wsz = jnp.dtype(wdt).itemsize
        weight_bytes = ((Dp * Hp + Hp * _LANE) * wsz + Hp * 4
                        + num_hidden * (Hp * Hp * wsz + Hp * 4))
        x_bytes = tb * Dp * jnp.dtype(xp.dtype).itemsize
        out_bytes = tb * _LANE * 4
        vmem_limit_bytes = min(
            max(2 * weight_bytes + 2 * x_bytes + 2 * out_bytes + (4 << 20),
                32 << 20),
            64 << 20)

    kernel = functools.partial(_mlp_kernel, num_hidden=num_hidden,
                               unroll=num_hidden <= 4)

    out_padded = pl.pallas_call(
        kernel,
        out_shape=jax.ShapeDtypeStruct((Bp, 1), x.dtype),
        grid_spec=pltpu.PrefetchScalarGridSpec(
            num_scalar_prefetch=0,
            grid=grid,
            in_specs=in_specs,
            out_specs=pl.BlockSpec((tb, 1), lambda i: (i, 0)),
        ),
        compiler_params=pltpu.CompilerParams(
            dimension_semantics=("parallel",),
            vmem_limit_bytes=int(vmem_limit_bytes),
        ),
    )(*args)

    return out_padded[:B]


def _reference_forward(x, params, num_layers):
    h = jnp.maximum(x @ params["w1"] + params["b1"], 0.0)
    for i in range(num_layers - 1):
        h = jnp.maximum(h @ params["wh"][i] + params["bh"][i], 0.0)
    return h @ params["w2"] + params["b2"]


if __name__ == "__main__":
    key = jax.random.PRNGKey(0)
    kx, kp, kp0, kpd, kxd = jax.random.split(key, 5)

    # Case 1: hidden layers present (num_layers=3 -> 2 hidden layers).
    input_dim, hidden_dim, num_layers, batch = 16, 32, 3, 8
    x = jax.random.normal(kx, (batch, input_dim), jnp.float32)
    params = init_params(kp, input_dim, hidden_dim, num_layers)
    ref = _reference_forward(x, params, num_layers)

    # 1a: default bf16 compute path (recommended) -> loose tolerance vs f32 ref.
    packed_bf16 = pack_params(params)                       # compute_dtype=bf16
    out_bf16 = jax.block_until_ready(base_model_forward(x, packed_bf16))
    assert out_bf16.shape == (batch, 1)
    assert jnp.allclose(out_bf16, ref, atol=5e-2, rtol=5e-2)

    # 1b: f32 compute path -> tight tolerance.
    packed_f32 = pack_params(params, compute_dtype=jnp.float32)
    out_f32 = jax.block_until_ready(base_model_forward(x, packed_f32))
    assert out_f32.shape == (batch, 1)
    assert jnp.allclose(out_f32, ref, atol=1e-3, rtol=1e-3)

    # Case 2: no hidden layers (num_layers=1) -> wh/bh never created or DMA'd.
    params0 = init_params(kp0, input_dim, hidden_dim, 1)
    packed0 = pack_params(params0, compute_dtype=jnp.float32)
    out0 = jax.block_until_ready(base_model_forward(x, packed0))
    ref0 = _reference_forward(x, params0, 1)
    assert out0.shape == (batch, 1)
    assert jnp.allclose(out0, ref0, atol=1e-3, rtol=1e-3)

    # Case 3: deep model (num_layers=6 -> fori_loop path), multi-step padded grid.
    batch_d = 24
    xd = jax.random.normal(kxd, (batch_d, input_dim), jnp.float32)
    params_d = init_params(kpd, input_dim, hidden_dim, 6)
    packed_d = pack_params(params_d, compute_dtype=jnp.float32)
    out_d = jax.block_until_ready(base_model_forward(xd, packed_d))
    ref_d = _reference_forward(xd, params_d, 6)
    assert out_d.shape == (batch_d, 1)
    assert jnp.allclose(out_d, ref_d, atol=1e-3, rtol=1e-3)

    print("KERNEL_OK")
</pallas_src>

<mosaic_0001>
module attributes {stable_mosaic.version = 11 : i64} {
  func.func @_mlp_kernel(%arg0: i32, %arg1: memref<8x128xbf16, #tpu.memory_space<vmem>>, %arg2: memref<128x128xbf16, #tpu.memory_space<vmem>>, %arg3: memref<1x128xf32, #tpu.memory_space<vmem>>, %arg4: memref<2x128x128xbf16, #tpu.memory_space<vmem>>, %arg5: memref<2x1x128xf32, #tpu.memory_space<vmem>>, %arg6: memref<128x128xbf16, #tpu.memory_space<vmem>>, %arg7: memref<1xf32, #tpu.memory_space<smem>>, %arg8: memref<8x1xf32, #tpu.memory_space<vmem>>) attributes {dimension_semantics = [#tpu.dimension_semantics<parallel>], iteration_bounds = array<i64: 1>, scalar_prefetch = 0 : i64, scratch_operands = 0 : i64, tpu.core_type = #tpu.core_type<tc>, window_params = [{transform_indices = @transform_0, window_bounds = array<i64: 8, 128>}, {pipeline_mode = #tpu.pipeline_mode<synchronous>, transform_indices = @transform_1, window_bounds = array<i64: 128, 128>}, {pipeline_mode = #tpu.pipeline_mode<synchronous>, transform_indices = @transform_2, window_bounds = array<i64: 1, 128>}, {pipeline_mode = #tpu.pipeline_mode<synchronous>, transform_indices = @transform_3, window_bounds = array<i64: 2, 128, 128>}, {pipeline_mode = #tpu.pipeline_mode<synchronous>, transform_indices = @transform_4, window_bounds = array<i64: 2, 1, 128>}, {pipeline_mode = #tpu.pipeline_mode<synchronous>, transform_indices = @transform_5, window_bounds = array<i64: 128, 128>}, {transform_indices = @transform_6, window_bounds = array<i64: 1>}, {transform_indices = @transform_7, window_bounds = array<i64: 8, 1>}]} {
    %c0 = arith.constant 0 : index
    %c0_0 = arith.constant 0 : index
    %0 = vector.load %arg1[%c0, %c0_0] : memref<8x128xbf16, #tpu.memory_space<vmem>>, vector<8x128xbf16>
    %c0_1 = arith.constant 0 : index
    %c0_2 = arith.constant 0 : index
    %1 = vector.load %arg2[%c0_1, %c0_2] : memref<128x128xbf16, #tpu.memory_space<vmem>>, vector<128x128xbf16>
    %cst = arith.constant dense<0.000000e+00> : vector<8x128xf32>
    %2 = tpu.matmul %0, %1, %cst {dimension_numbers = #tpu.dot_dimension_numbers<[1], [0], [0], [1], [0, 0, 1, 1], [], []>} : vector<8x128xbf16>, vector<128x128xbf16>, vector<8x128xf32> -> vector<8x128xf32>
    %c0_3 = arith.constant 0 : index
    %c0_4 = arith.constant 0 : index
    %3 = vector.load %arg3[%c0_3, %c0_4] : memref<1x128xf32, #tpu.memory_space<vmem>>, vector<1x128xf32>
    %4 = vector.broadcast %3 : vector<1x128xf32> to vector<8x128xf32>
    %5 = arith.addf %2, %4 : vector<8x128xf32>
    %cst_5 = arith.constant 0.000000e+00 : f32
    %6 = vector.broadcast %cst_5 : f32 to vector<8x128xf32>
    %7 = arith.maximumf %5, %6 : vector<8x128xf32>
    %8 = arith.truncf %7 : vector<8x128xf32> to vector<8x128xbf16>
    %c0_6 = arith.constant 0 : index
    %c0_7 = arith.constant 0 : index
    %c0_8 = arith.constant 0 : index
    %9 = vector.load %arg4[%c0_6, %c0_7, %c0_8] : memref<2x128x128xbf16, #tpu.memory_space<vmem>>, vector<1x128x128xbf16>
    %10 = vector.shape_cast %9 : vector<1x128x128xbf16> to vector<128x128xbf16>
    %cst_9 = arith.constant dense<0.000000e+00> : vector<8x128xf32>
    %11 = tpu.matmul %8, %10, %cst_9 {dimension_numbers = #tpu.dot_dimension_numbers<[1], [0], [0], [1], [0, 0, 1, 1], [], []>} : vector<8x128xbf16>, vector<128x128xbf16>, vector<8x128xf32> -> vector<8x128xf32>
    %c0_10 = arith.constant 0 : index
    %c0_11 = arith.constant 0 : index
    %c0_12 = arith.constant 0 : index
    %12 = vector.load %arg5[%c0_10, %c0_11, %c0_12] : memref<2x1x128xf32, #tpu.memory_space<vmem>>, vector<1x1x128xf32>
    %13 = vector.shape_cast %12 : vector<1x1x128xf32> to vector<1x128xf32>
    %14 = vector.broadcast %13 : vector<1x128xf32> to vector<8x128xf32>
    %15 = arith.addf %11, %14 : vector<8x128xf32>
    %cst_13 = arith.constant 0.000000e+00 : f32
    %16 = vector.broadcast %cst_13 : f32 to vector<8x128xf32>
    %17 = arith.maximumf %15, %16 : vector<8x128xf32>
    %18 = arith.truncf %17 : vector<8x128xf32> to vector<8x128xbf16>
    %c1 = arith.constant 1 : index
    %c0_14 = arith.constant 0 : index
    %c0_15 = arith.constant 0 : index
    %19 = vector.load %arg4[%c1, %c0_14, %c0_15] : memref<2x128x128xbf16, #tpu.memory_space<vmem>>, vector<1x128x128xbf16>
    %20 = vector.shape_cast %19 : vector<1x128x128xbf16> to vector<128x128xbf16>
    %cst_16 = arith.constant dense<0.000000e+00> : vector<8x128xf32>
    %21 = tpu.matmul %18, %20, %cst_16 {dimension_numbers = #tpu.dot_dimension_numbers<[1], [0], [0], [1], [0, 0, 1, 1], [], []>} : vector<8x128xbf16>, vector<128x128xbf16>, vector<8x128xf32> -> vector<8x128xf32>
    %c1_17 = arith.constant 1 : index
    %c0_18 = arith.constant 0 : index
    %c0_19 = arith.constant 0 : index
    %22 = vector.load %arg5[%c1_17, %c0_18, %c0_19] : memref<2x1x128xf32, #tpu.memory_space<vmem>>, vector<1x1x128xf32>
    %23 = vector.shape_cast %22 : vector<1x1x128xf32> to vector<1x128xf32>
    %24 = vector.broadcast %23 : vector<1x128xf32> to vector<8x128xf32>
    %25 = arith.addf %21, %24 : vector<8x128xf32>
    %cst_20 = arith.constant 0.000000e+00 : f32
    %26 = vector.broadcast %cst_20 : f32 to vector<8x128xf32>
    %27 = arith.maximumf %25, %26 : vector<8x128xf32>
    %28 = arith.truncf %27 : vector<8x128xf32> to vector<8x128xbf16>
    %c0_21 = arith.constant 0 : index
    %c0_22 = arith.constant 0 : index
    %29 = vector.load %arg6[%c0_21, %c0_22] : memref<128x128xbf16, #tpu.memory_space<vmem>>, vector<128x128xbf16>
    %cst_23 = arith.constant dense<0.000000e+00> : vector<8x128xf32>
    %30 = tpu.matmul %28, %29, %cst_23 {dimension_numbers = #tpu.dot_dimension_numbers<[1], [0], [0], [1], [0, 0, 1, 1], [], []>} : vector<8x128xbf16>, vector<128x128xbf16>, vector<8x128xf32> -> vector<8x128xf32>
    %c0_24 = arith.constant 0 : index
    %31 = memref.load %arg7[%c0_24] : memref<1xf32, #tpu.memory_space<smem>>
    %32 = vector.broadcast %31 : f32 to vector<8x128xf32>
    %33 = arith.addf %30, %32 : vector<8x128xf32>
    %34 = vector.extract_strided_slice %33 {offsets = [0, 0], sizes = [8, 1], strides = [1, 1]} : vector<8x128xf32> to vector<8x1xf32>
    %c0_25 = arith.constant 0 : index
    %c0_26 = arith.constant 0 : index
    %35 = vector.load %arg8[%c0_25, %c0_26] : memref<8x1xf32, #tpu.memory_space<vmem>>, vector<8x1xf32>
    tpu.vector_store %arg8[%c0_25, %c0_26], %34 {strides = array<i32>} : memref<8x1xf32, #tpu.memory_space<vmem>>, vector<8x1xf32>,
    return
  }
  func.func @transform_0(%arg0: i32) -> (i32, i32) {
    %c0_i32 = arith.constant 0 : i32
    %c0_i32_0 = arith.constant 0 : i32
    return %arg0, %c0_i32 : i32, i32
  }
  func.func @transform_1(%arg0: i32) -> (i32, i32) {
    %c0_i32 = arith.constant 0 : i32
    %c0_i32_0 = arith.constant 0 : i32
    %c0_i32_1 = arith.constant 0 : i32
    return %c0_i32, %c0_i32_0 : i32, i32
  }
  func.func @transform_2(%arg0: i32) -> (i32, i32) {
    %c0_i32 = arith.constant 0 : i32
    %c0_i32_0 = arith.constant 0 : i32
    %c0_i32_1 = arith.constant 0 : i32
    return %c0_i32, %c0_i32_0 : i32, i32
  }
  func.func @transform_3(%arg0: i32) -> (i32, i32, i32) {
    %c0_i32 = arith.constant 0 : i32
    %c0_i32_0 = arith.constant 0 : i32
    %c0_i32_1 = arith.constant 0 : i32
    %c0_i32_2 = arith.constant 0 : i32
    return %c0_i32, %c0_i32_0, %c0_i32_1 : i32, i32, i32
  }
  func.func @transform_4(%arg0: i32) -> (i32, i32, i32) {
    %c0_i32 = arith.constant 0 : i32
    %c0_i32_0 = arith.constant 0 : i32
    %c0_i32_1 = arith.constant 0 : i32
    %c0_i32_2 = arith.constant 0 : i32
    return %c0_i32, %c0_i32_0, %c0_i32_1 : i32, i32, i32
  }
  func.func @transform_5(%arg0: i32) -> (i32, i32) {
    %c0_i32 = arith.constant 0 : i32
    %c0_i32_0 = arith.constant 0 : i32
    %c0_i32_1 = arith.constant 0 : i32
    return %c0_i32, %c0_i32_0 : i32, i32
  }
  func.func @transform_6(%arg0: i32) -> i32 {
    %c0_i32 = arith.constant 0 : i32
    %c0_i32_0 = arith.constant 0 : i32
    return %c0_i32 : i32
  }
  func.func @transform_7(%arg0: i32) -> (i32, i32) {
    %c0_i32 = arith.constant 0 : i32
    %c0_i32_0 = arith.constant 0 : i32
    return %arg0, %c0_i32 : i32, i32
  }
}

</mosaic_0001>

<bundles_post_ra>
// kernel: tpu_custom_call.1
= control target key start
LH: loop header
LB: loop body
LE: loop exit
PB: predicated region body
PF: predicated region fallthrough
CT: control target
= control target key end

     0   :  { %13 = vsyncpa [#allocation4], 0  ;;  %s940_s0 = inlined_call_operand.hbm [shape: bf16[8,128], index: 0, kind: input, shape index: {}]   ;;  %s941_s1 = inlined_call_operand.hbm [shape: bf16[128,128], index: 1, kind: input, shape index: {}]   ;;  %s942_s2 = inlined_call_operand.vmem [shape: f32[1,128], index: 2, kind: input, shape index: {}]   ;;  %s943_s3 = inlined_call_operand.hbm [shape: bf16[2,128,128], index: 3, kind: input, shape index: {}]   ;;  %s944_s4 = inlined_call_operand.vmem [shape: f32[2,1,128], index: 4, kind: input, shape index: {}]   ;;  %s945_s5 = inlined_call_operand.hbm [shape: bf16[128,128], index: 5, kind: input, shape index: {}]   ;;  %s946_s6 = inlined_call_operand.<no memory space> [shape: f32[1], index: 6, kind: input, shape index: {}]   ;;  %s947_s7 = inlined_call_operand.vmem [shape: f32[8,1], index: 7, kind: output, shape index: {}]  }
   0x1   :  { %14 = vsyncpa [#allocation6], 0 }
   0x2   :  { %15 = vsyncpa [#allocation9], 0  ;;  %s816_s24 = smov [#allocation5]  }
   0x3   :  { %s31_s25 = sshll.u32 %s816_s24, 4  ;;  %s32_s25 = int_to_ptr.vmem [resolvable:$true] %s31_s25 }
   0x4   :  { %s738_s26 = scalar_lea.vmem %s32_s25, 1024  ;;  %p743_p1 = scmp.lt.s32.totalorder %s32_s25, %s32_s25 }
   0x5   :  { %p739_p0 = scmp.ne.s32.totalorder %s32_s25, %s738_s26  ;;  %p744_p2 = scmp.lt.s32.totalorder %s738_s26, %s738_s26 }
   0x7   :  { %p745_p3 = por %p744_p2, %p743_p1 }
   0x9   :  { %p746_p4 = pnand %p745_p3, %p739_p0 }
   0xb   :  { %749 = shalt.err (!%p746_p4)
}
   0xc   :  { %s817_s27 = smov 64   ;;  %s818_s28 = smov 4  }
   0xd   :  { %37 = dma.hbm_to_vmem [thread:$0]  %s941_s1, 1024, %s32_s25, [#allocation6], %s817_s27, %s817_s27, %s818_s28  }
   0xe   :  { %s819_s8 = smov [#allocation3]   ;;  %s820_s10 = smov [#allocation7]  }
   0xf   :  { %s22_s9 = sshll.u32 %s819_s8, 4  ;;  %s45_s11 = sshll.u32 %s820_s10, 4  ;;  %s23_s9 = int_to_ptr.vmem [resolvable:$true] %s22_s9  ;;  %s46_s11 = int_to_ptr.vmem [resolvable:$true] %s45_s11 }
  0x10   :  { %s758_s12 = scalar_lea.vmem %s23_s9, 64  ;;  %p763_p6 = scmp.lt.s32.totalorder %s23_s9, %s23_s9 }
  0x11   :  { %p759_p5 = scmp.ne.s32.totalorder %s23_s9, %s758_s12  ;;  %p764_p7 = scmp.lt.s32.totalorder %s758_s12, %s758_s12 }
  0x13   :  { %p765_p8 = por %p764_p7, %p763_p6 }
  0x15   :  { %p766_p9 = pnand %p765_p8, %p759_p5 }
  0x17   :  { %769 = shalt.err (!%p766_p9)
}
  0x18   :  { %25 = dma.hbm_to_vmem [thread:$0]  %s940_s0, 64, %s23_s9, [#allocation4]  }
  0x19   :  { %s778_s15 = scalar_lea.vmem %s46_s11, 2048  ;;  %p783_p11 = scmp.lt.s32.totalorder %s46_s11, %s46_s11 }
  0x1a   :  { %p779_p10 = scmp.ne.s32.totalorder %s46_s11, %s778_s15  ;;  %p784_p12 = scmp.lt.s32.totalorder %s778_s15, %s778_s15 }
  0x1c   :  { %p785_p13 = por %p784_p12, %p783_p11 }
  0x1e   :  { %p786_p0 = pnand %p785_p13, %p779_p10 }
  0x20   :  { %789 = shalt.err (!%p786_p0)
}
  0x21   :  { %51 = dma.hbm_to_vmem [thread:$0]  %s943_s3, 2048, %s46_s11, [#allocation6], %s817_s27, %s817_s27, %s818_s28  }
  0x22   :  { %s821_s17 = smov [#allocation8]  }
  0x23   :  { %s59_s18 = sshll.u32 %s821_s17, 4  ;;  %s60_s18 = int_to_ptr.vmem [resolvable:$true] %s59_s18 }
  0x24   :  { %s798_s19 = scalar_lea.vmem %s60_s18, 1024  ;;  %p803_p2 = scmp.lt.s32.totalorder %s60_s18, %s60_s18 }
  0x25   :  { %p799_p1 = scmp.ne.s32.totalorder %s60_s18, %s798_s19  ;;  %p804_p3 = scmp.lt.s32.totalorder %s798_s19, %s798_s19 }
  0x27   :  { %p805_p4 = por %p804_p3, %p803_p2 }
  0x29   :  { %p806_p5 = pnand %p805_p4, %p799_p1 }
  0x2b   :  { %809 = shalt.err (!%p806_p5)
}
  0x2c   :  { %65 = dma.hbm_to_vmem [thread:$0]  %s945_s5, 1024, %s60_s18, [#allocation9], %s817_s27, %s817_s27, %s818_s28  }
  0x2d   :  { %810 = dma.done.wait [#allocation4], 64  }
  0x2e   :  { %811 = vsyncadd [#allocation4], 4294967232 }
  0x2f   :  { %812 = dma.done.wait [#allocation6], 3072  }
  0x30   :  { %813 = vsyncadd [#allocation6], 4294964224 }
  0x31   :  { %814 = dma.done.wait [#allocation9], 1024  }
  0x32   :  { %815 = vsyncadd [#allocation9], 4294966272  ;;  %v822_v0 = vmov 0.0   ;;  %vm823_vm0 = vmmov 0   ;;  %v698_v1 = vld [vmem:[#allocation5 + $0x38] sm:$0xff]   ;;  %v699_v2 = vld [vmem:[#allocation5 + $0x30] sm:$0xff]   ;;  %v440_v58 = vstv %s946_s6 }
  0x33   :  { %610 = vmatprep.subr.bf16.mxu0 %v822_v0  ;;  %626 = vmatprep.mubr.msk.bf16.mxu0 %vm823_vm0, %v822_v0  ;;  %v700_v3 = vld [vmem:[#allocation5 + $0x28] sm:$0xff]   ;;  %v706_v4 = vld [vmem:[#allocation7 + $0x38] sm:$0xff]   ;;  %v701_v5 = vld [vmem:[#allocation5 + $0x20] sm:$0xff]   ;;  %vm529_vm1 = vcmask 7168  }
  0x34   :  { %630 = vmatprep.subr.bf16.mxu1 %v822_v0  ;;  %646 = vmatprep.mubr.msk.bf16.mxu1 %vm823_vm0, %v822_v0  ;;  %v707_v6 = vld [vmem:[#allocation7 + $0x30] sm:$0xff]   ;;  %v702_v7 = vld [vmem:[#allocation5 + $0x18] sm:$0xff]   ;;  %v708_v8 = vld [vmem:[#allocation7 + $0x28] sm:$0xff]  }
  0x35   :  { %611 = vmatpush3.bf16.msra.mxu0 %v698_v1  ;;  %631 = vmatpush3.bf16.msra.mxu1 %v706_v4  ;;  %v703_v9 = vld [vmem:[#allocation5 + $0x10] sm:$0xff]   ;;  %v709_v10 = vld [vmem:[#allocation7 + $0x20] sm:$0xff]   ;;  %v704_v11 = vld [vmem:[#allocation5 + $0x8] sm:$0xff]  }
  0x36   :  { %612 = vmatprep.subr.bf16.mxu0 %v822_v0  ;;  %632 = vmatprep.subr.bf16.mxu1 %v822_v0  ;;  %v710_v12 = vld [vmem:[#allocation7 + $0x18] sm:$0xff]   ;;  %v705_v13 = vld [vmem:[#allocation5] sm:$0xff]   ;;  %v711_v14 = vld [vmem:[#allocation7 + $0x10] sm:$0xff]  }
  0x37   :  { %v81_v15 = vld [vmem:[#allocation3] sm:$0xf]  ;;  %v712_v16 = vld [vmem:[#allocation7 + $0x8] sm:$0xff]   ;;  %v713_v17 = vld [vmem:[#allocation7] sm:$0xff]  }
  0x38   :  { %v714_v18 = vld [vmem:[#allocation7 + $0x78] sm:$0xff]   ;;  %v715_v19 = vld [vmem:[#allocation7 + $0x70] sm:$0xff]   ;;  %v716_v20 = vld [vmem:[#allocation7 + $0x68] sm:$0xff]  }
  0x39   :  { %613 = vmatpush3.bf16.msra.mxu0 %v699_v2  ;;  %633 = vmatpush3.bf16.msra.mxu1 %v707_v6  ;;  %v717_v21 = vld [vmem:[#allocation7 + $0x60] sm:$0xff]   ;;  %v718_v22 = vld [vmem:[#allocation7 + $0x58] sm:$0xff]   ;;  %v719_v23 = vld [vmem:[#allocation7 + $0x50] sm:$0xff]  }
  0x3a   :  { %614 = vmatprep.subr.bf16.mxu0 %v822_v0  ;;  %634 = vmatprep.subr.bf16.mxu1 %v822_v0  ;;  %v538_v24 = vld [vmem:[%s942_s2] ss:$0 sm:$0xff]  ;;  %v720_v32 = vld [vmem:[#allocation7 + $0x48] sm:$0xff]   ;;  %v721_v33 = vld [vmem:[#allocation7 + $0x40] sm:$0xff]  }
  0x3b   :  { %v722_v34 = vld [vmem:[#allocation8 + $0x38] sm:$0xff]   ;;  %v723_v35 = vld [vmem:[#allocation8 + $0x30] sm:$0xff]   ;;  %v724_v36 = vld [vmem:[#allocation8 + $0x28] sm:$0xff]  }
  0x3c   :  { %v725_v37 = vld [vmem:[#allocation8 + $0x20] sm:$0xff]   ;;  %v726_v38 = vld [vmem:[#allocation8 + $0x18] sm:$0xff]   ;;  %v727_v39 = vld [vmem:[#allocation8 + $0x10] sm:$0xff]  }
  0x3d   :  { %615 = vmatpush3.bf16.msra.mxu0 %v700_v3  ;;  %635 = vmatpush3.bf16.msra.mxu1 %v708_v8  ;;  %v547_v40 = vld [vmem:[%s944_s4] ss:$0 sm:$0xff]  ;;  %v728_v48 = vld [vmem:[#allocation8 + $0x8] sm:$0xff]   ;;  %v729_v49 = vld [vmem:[#allocation8] sm:$0xff]  }
  0x3e   :  { %616 = vmatprep.subr.bf16.mxu0 %v822_v0  ;;  %636 = vmatprep.subr.bf16.mxu1 %v822_v0  ;;  %v557_v50 = vld [vmem:[%s944_s4 + $0x1] ss:$0 sm:$0xff] }
  0x41   :  { %617 = vmatpush3.bf16.msra.mxu0 %v701_v5  ;;  %637 = vmatpush3.bf16.msra.mxu1 %v709_v10 }
  0x42   :  { %618 = vmatprep.subr.bf16.mxu0 %v822_v0  ;;  %638 = vmatprep.subr.bf16.mxu1 %v822_v0 }
  0x45   :  { %619 = vmatpush3.bf16.msra.mxu0 %v702_v7  ;;  %639 = vmatpush3.bf16.msra.mxu1 %v710_v12 }
  0x46   :  { %620 = vmatprep.subr.bf16.mxu0 %v822_v0  ;;  %640 = vmatprep.subr.bf16.mxu1 %v822_v0 }
  0x49   :  { %621 = vmatpush3.bf16.msra.mxu0 %v703_v9  ;;  %641 = vmatpush3.bf16.msra.mxu1 %v711_v14 }
  0x4a   :  { %622 = vmatprep.subr.bf16.mxu0 %v822_v0  ;;  %642 = vmatprep.subr.bf16.mxu1 %v822_v0 }
  0x4d   :  { %623 = vmatpush3.bf16.msra.mxu0 %v704_v11  ;;  %643 = vmatpush3.bf16.msra.mxu1 %v712_v16 }
  0x4e   :  { %624 = vmatprep.subr.bf16.mxu0 %v822_v0  ;;  %644 = vmatprep.subr.bf16.mxu1 %v822_v0 }
  0x51   :  { %625 = vmatpush3.bf16.msra.mxu0 %v705_v13  ;;  %645 = vmatpush3.bf16.msra.mxu1 %v713_v17 }
  0x52   :  { %650 = vmatprep.subr.bf16.mxu0 %v822_v0  ;;  %670 = vmatprep.subr.bf16.mxu1 %v822_v0 }
  0x54   :  { %627 = vmatmul.mubr.bf16.vlgmr.msra.gmra.mxu0 %v81_v15 }
  0x55   :  { %666 = vmatprep.mubr.msk.bf16.mxu0 %vm823_vm0, %v822_v0  ;;  %651 = vmatpush3.bf16.msra.mxu0 %v714_v18 }
  0x56   :  { %652 = vmatprep.subr.bf16.mxu0 %v822_v0 }
  0x59   :  { %653 = vmatpush3.bf16.msra.mxu0 %v715_v19 }
  0x5a   :  { %654 = vmatprep.subr.bf16.mxu0 %v822_v0 }
  0x5d   :  { %655 = vmatpush3.bf16.msra.mxu0 %v716_v20 }
  0x5e   :  { %656 = vmatprep.subr.bf16.mxu0 %v822_v0 }
  0x61   :  { %657 = vmatpush3.bf16.msra.mxu0 %v717_v21 }
  0x62   :  { %658 = vmatprep.subr.bf16.mxu0 %v822_v0 }
  0x65   :  { %659 = vmatpush3.bf16.msra.mxu0 %v718_v22 }
  0x66   :  { %660 = vmatprep.subr.bf16.mxu0 %v822_v0 }
  0x69   :  { %661 = vmatpush3.bf16.msra.mxu0 %v719_v23 }
  0x6a   :  { %662 = vmatprep.subr.bf16.mxu0 %v822_v0 }
  0x6d   :  { %663 = vmatpush3.bf16.msra.mxu0 %v720_v32 }
  0x6e   :  { %664 = vmatprep.subr.bf16.mxu0 %v822_v0 }
  0x71   :  { %665 = vmatpush3.bf16.msra.mxu0 %v721_v33 }
 0x114   :  { %v187_v25 = vpop.f32.mrf.mxu0 }
 0x115   :  { %v188_v26 = vadd.f32 %v538_v24, %v187_v25 }
 0x116   :  { %v628_v27 = vpop.f32.mrf.mxu0 }
 0x117   :  { %v193_v28 = vmax.f32 %v188_v26, 0.0 }
 0x118   :  { %v190_v29 = vpop.f32.mrf.mxu0 }
 0x119   :  { %v194_v30 = vpack.c.bf16 %v193_v28, %v193_v28 }
 0x11a   :  { %v629_v31 = vpop.f32.mrf.mxu0 }
 0x11b   :  { %647 = vmatmul.mubr.bf16.vlgmr.msra.gmra.mxu1 %v194_v30 }
 0x11c   :  { %686 = vmatprep.mubr.msk.bf16.mxu1 %vm823_vm0, %v822_v0  ;;  %671 = vmatpush3.bf16.msra.mxu1 %v722_v34 }
 0x11d   :  { %672 = vmatprep.subr.bf16.mxu1 %v822_v0 }
 0x120   :  { %673 = vmatpush3.bf16.msra.mxu1 %v723_v35 }
 0x121   :  { %674 = vmatprep.subr.bf16.mxu1 %v822_v0 }
 0x124   :  { %675 = vmatpush3.bf16.msra.mxu1 %v724_v36 }
 0x125   :  { %676 = vmatprep.subr.bf16.mxu1 %v822_v0 }
 0x128   :  { %677 = vmatpush3.bf16.msra.mxu1 %v725_v37 }
 0x129   :  { %678 = vmatprep.subr.bf16.mxu1 %v822_v0 }
 0x12c   :  { %679 = vmatpush3.bf16.msra.mxu1 %v726_v38 }
 0x12d   :  { %680 = vmatprep.subr.bf16.mxu1 %v822_v0 }
 0x130   :  { %681 = vmatpush3.bf16.msra.mxu1 %v727_v39 }
 0x131   :  { %682 = vmatprep.subr.bf16.mxu1 %v822_v0 }
 0x134   :  { %683 = vmatpush3.bf16.msra.mxu1 %v728_v48 }
 0x135   :  { %684 = vmatprep.subr.bf16.mxu1 %v822_v0 }
 0x138   :  { %685 = vmatpush3.bf16.msra.mxu1 %v729_v49 }
 0x1db   :  { %v300_v41 = vpop.f32.mrf.mxu1 }
 0x1dc   :  { %v301_v42 = vadd.f32 %v547_v40, %v300_v41 }
 0x1dd   :  { %v648_v43 = vpop.f32.mrf.mxu1 }
 0x1de   :  { %v306_v44 = vmax.f32 %v301_v42, 0.0 }
 0x1df   :  { %v303_v45 = vpop.f32.mrf.mxu1 }
 0x1e0   :  { %v307_v46 = vpack.c.bf16 %v306_v44, %v306_v44 }
 0x1e1   :  { %v649_v47 = vpop.f32.mrf.mxu1 }
 0x1e2   :  { %667 = vmatmul.mubr.bf16.vlgmr.msra.gmra.mxu0 %v307_v46 }
 0x2a2   :  { %v415_v51 = vpop.f32.mrf.mxu0 }
 0x2a3   :  { %v416_v52 = vadd.f32 %v557_v50, %v415_v51 }
 0x2a4   :  { %v668_v53 = vpop.f32.mrf.mxu0 }
 0x2a5   :  { %v421_v54 = vmax.f32 %v416_v52, 0.0 }
 0x2a6   :  { %v418_v55 = vpop.f32.mrf.mxu0 }
 0x2a7   :  { %v422_v56 = vpack.c.bf16 %v421_v54, %v421_v54 }
 0x2a8   :  { %v669_v57 = vpop.f32.mrf.mxu0 }
 0x2a9   :  { %687 = vmatmul.mubr.bf16.vlgmr.msra.gmra.mxu1 %v422_v56 }
 0x369   :  { %v523_v59 = vpop.f32.mrf.mxu1 }
 0x36a   :  { %v524_v60 = vadd.f32 %v523_v59, %v440_v58 }
 0x36b   :  { %v688_v61 = vpop.f32.mrf.mxu1 }
 0x36c   :  { %530 = vst.msk [vmem:[%s947_s7] sm:$0xff] %vm529_vm1, %v524_v60 }
 0x36d   :  { %v526_v62 = vpop.f32.mrf.mxu1 }
 0x36f   :  { %v689_v63 = vpop.f32.mrf.mxu1 }
 0x370   :  { %535 = vsyncpa [#allocation4], 1 }
 0x371   :  { %536 = vsyncpa [#allocation6], 1 }
 0x372   :  { %537 = vsyncpa [#allocation9], 1 }

</bundles_post_ra>
